<compile_context>
chip_gen: v7x
topology: tpu7x:2x2x1
jax: 0.10.0
libtpu: 0.0.40
codegen_flags: <defaults>
</compile_context>

<pallas_src>
import functools

import numpy as np
import jax
import jax.numpy as jnp
from jax import lax
from jax.experimental import pallas as pl
from jax.experimental.pallas import tpu as pltpu

ALPHA = 3.0
LANE = 128


# ---------------------------------------------------------------------------
# Single fused kernel: fused linear+tanh, one K=nb*dim contraction, W terms,
# relu(tanh), and in-kernel row-wise top-k masking.
# ---------------------------------------------------------------------------
def _fused_adj_kernel(e1_ref, e2_ref, w_ref, p_ref, q_ref, out_ref, *,
                      nnodes, c_pad, k, alpha):
    wf = w_ref[...]                                           # (K_in, K_out)

    # Fused per-block linear + bias + tanh.  e*_aug rows outside a block's
    # window are all-zero (including the indicator/bias column), so nv* are
    # exactly zero there -> the big contraction below assembles blocks with
    # no masking.
    nv1 = jnp.tanh(alpha * lax.dot_general(
        e1_ref[...], wf, (((1,), (0,)), ((), ())),
        preferred_element_type=jnp.float32))                  # (nnodes, K_out)
    nv2 = jnp.tanh(alpha * lax.dot_general(
        e2_ref[...], wf, (((1,), (0,)), ((), ())),
        preferred_element_type=jnp.float32))                  # (c_pad,  K_out)

    # One MXU push, K = nb*dim, assembles all n_mod^2 blocks at once.
    a = lax.dot_general(nv1, nv2, (((1,), (1,)), ((), ())),
                        preferred_element_type=jnp.float32)   # (nnodes, c_pad)
    # Fused W(pre_adj) terms (bias folded into the last column of each slot).
    a = a + lax.dot_general(p_ref[...], q_ref[...], (((1,), (1,)), ((), ())),
                            preferred_element_type=jnp.float32)

    adj = jnp.maximum(jnp.tanh(alpha * a), 0.0)               # (nnodes, c_pad)

    # ---- row-wise top-k mask (leftmost tie-break, matches lax.top_k) -------
    col_ids = lax.broadcasted_iota(jnp.int32, (nnodes, c_pad), 1)
    neg = jnp.float32(-1e30)
    work = jnp.where(col_ids < nnodes, adj, neg)              # exclude pad lanes
    keep = jnp.zeros((nnodes, c_pad), jnp.bool_)
    for _ in range(k):                                        # k is small & static
        rmax = jnp.max(work, axis=1, keepdims=True)
        is_max = work == rmax
        argcol = jnp.min(jnp.where(is_max, col_ids, c_pad),   # int32 reduce
                         axis=1, keepdims=True)
        sel = col_ids == argcol
        keep = jnp.logical_or(keep, sel)
        work = jnp.where(sel, neg, work)

    out_ref[...] = jnp.where(keep, adj, 0.0)                  # lane-dense store


# ---------------------------------------------------------------------------
# One-time packing of all (static) parameters into 5 lane-dense operands.
# ---------------------------------------------------------------------------
def prepare_packed(params, pre_adj_list, dim):
    l_matrix = [int(p.shape[0]) for p in pre_adj_list]
    n_mod = len(l_matrix)
    nb = n_mod * n_mod
    nnodes = int(sum(l_matrix))
    c_pad = max(LANE, ((nnodes + LANE - 1) // LANE) * LANE)
    offsets = [0]
    for n in l_matrix:
        offsets.append(offsets[-1] + n)

    k_in = nb * dim + nb      # emb lanes + one indicator/bias lane per block
    k_out = nb * dim

    e1 = np.zeros((nnodes, k_in), np.float32)
    e2 = np.zeros((c_pad, k_in), np.float32)
    wf = np.zeros((k_in, k_out), np.float32)
    w_blocks = []

    for i in range(n_mod):
        for j in range(n_mod):
            b = i * n_mod + j            # lin1[b], emb1[b]   -> nodevec1
            m2 = j * n_mod + i           # emb1[m2]           -> nodevec2
            r0, ni = offsets[i], l_matrix[i]
            c0, nj = offsets[j], l_matrix[j]
            e1[r0:r0 + ni, b * dim:(b + 1) * dim] = np.asarray(params["emb"][b])
            e1[r0:r0 + ni, nb * dim + b] = 1.0
            e2[c0:c0 + nj, b * dim:(b + 1) * dim] = np.asarray(params["emb"][m2])
            e2[c0:c0 + nj, nb * dim + b] = 1.0
            wf[b * dim:(b + 1) * dim, b * dim:(b + 1) * dim] = \
                np.asarray(params["lin_w"][b]).T
            wf[nb * dim + b, b * dim:(b + 1) * dim] = np.asarray(params["lin_b"][b])[0]
            if ni == nj:                 # mirrors a.shape[0] == a.shape[1]
                w_blocks.append((b // n_mod, r0, ni, c0, nj))  # index = m // n_mod

    kw = sum(ni + 1 for (_, _, ni, _, _) in w_blocks)
    p_pack = np.zeros((nnodes, kw), np.float32)
    q_pack = np.zeros((c_pad, kw), np.float32)
    lw = 0
    for (wi, r0, ni, c0, nj) in w_blocks:
        p_pack[r0:r0 + ni, lw:lw + ni] = np.asarray(pre_adj_list[wi])
        p_pack[r0:r0 + ni, lw + ni] = 1.0                       # bias "ones" col
        q_pack[c0:c0 + nj, lw:lw + ni] = np.asarray(params["W_w"][wi])
        q_pack[c0:c0 + nj, lw + ni] = np.asarray(params["W_b"][wi])[0]
        lw += ni + 1

    packed = dict(e1_aug=jnp.asarray(e1), e2_aug=jnp.asarray(e2),
                  w_fused=jnp.asarray(wf), p_pack=jnp.asarray(p_pack),
                  q_pack=jnp.asarray(q_pack))
    return packed, nnodes, c_pad


# ---------------------------------------------------------------------------
# Forward pass (single fused pallas_call on pre-packed operands)
# ---------------------------------------------------------------------------
@functools.partial(jax.jit, static_argnames=("nnodes", "c_pad", "k"))
def multigraph_forward_pallas(e1_aug, e2_aug, w_fused, p_pack, q_pack, *,
                              nnodes, c_pad, k):
    assert 0 < k <= nnodes, "top-k requires k <= nnodes"
    k_in, k_out = w_fused.shape
    kw = p_pack.shape[1]

    flops = (2 * nnodes * k_in * k_out + 2 * c_pad * k_in * k_out
             + 2 * nnodes * c_pad * k_out + 2 * nnodes * c_pad * kw)
    trans = nnodes * k_out + c_pad * k_out + nnodes * c_pad
    bytes_accessed = 4 * (e1_aug.size + e2_aug.size + w_fused.size
                          + p_pack.size + q_pack.size + nnodes * c_pad)

    kernel = functools.partial(_fused_adj_kernel, nnodes=nnodes, c_pad=c_pad,
                               k=int(k), alpha=ALPHA)

    out = pl.pallas_call(
        kernel,
        out_shape=jax.ShapeDtypeStruct((nnodes, c_pad), jnp.float32),
        cost_estimate=pl.CostEstimate(flops=int(flops),
                                      transcendentals=int(trans),
                                      bytes_accessed=int(bytes_accessed)),
        compiler_params=pltpu.CompilerParams(vmem_limit_bytes=32 * 1024 * 1024),
    )(e1_aug, e2_aug, w_fused, p_pack, q_pack)

    return out[:, :nnodes]


# ---------------------------------------------------------------------------
# Pure-JAX reference (replicates the PyTorch forward) for correctness checking
# ---------------------------------------------------------------------------
def multigraph_forward_reference(params, pre_adj_list, k):
    l_matrix = [p.shape[0] for p in pre_adj_list]
    n_mod = len(l_matrix)
    blocks = []
    for i in range(n_mod):
        for j in range(n_mod):
            m = i * n_mod + j
            m2 = j * n_mod + i
            e1 = params["emb"][m]
            e2 = params["emb"][m2]
            wl, bl = params["lin_w"][m], params["lin_b"][m]
            nv1 = jnp.tanh(ALPHA * (e1 @ wl.T + bl))
            nv2 = jnp.tanh(ALPHA * (e2 @ wl.T + bl))
            a = nv1 @ nv2.T
            if l_matrix[i] == l_matrix[j]:
                w_idx = m // n_mod
                a = a + (pre_adj_list[w_idx] @ params["W_w"][w_idx].T
                         + params["W_b"][w_idx])
            blocks.append(jnp.maximum(jnp.tanh(ALPHA * a), 0.0))
    rows = [jnp.concatenate(blocks[i * n_mod:(i + 1) * n_mod], axis=1)
            for i in range(n_mod)]
    adj = jnp.concatenate(rows, axis=0)
    _, t1 = lax.top_k(adj, k)
    nn = adj.shape[0]
    mask = jnp.zeros_like(adj).at[jnp.arange(nn)[:, None], t1].set(1.0)
    return adj * mask


# ---------------------------------------------------------------------------
# Deterministic parameter construction (mirrors the module's __init__ shapes)
# ---------------------------------------------------------------------------
def make_params(key, l_matrix, dim):
    n_mod = len(l_matrix)
    emb, lin_w, lin_b, W_w, W_b = [], [], [], [], []
    for i in range(n_mod):
        for j in range(n_mod):
            key, k1, k2, k3 = jax.random.split(key, 4)
            n_sub1 = l_matrix[i]
            emb.append(jax.random.normal(k1, (n_sub1, dim), jnp.float32) * 0.5)
            lin_w.append(jax.random.normal(k2, (dim, dim), jnp.float32) * 0.3)
            lin_b.append(jax.random.normal(k3, (1, dim), jnp.float32) * 0.1)
    for n in l_matrix:
        key, k1, k2 = jax.random.split(key, 3)
        W_w.append(jax.random.normal(k1, (n, n), jnp.float32) * 0.3)
        W_b.append(jax.random.normal(k2, (1, n), jnp.float32) * 0.1)
    return {"emb": emb, "lin_w": lin_w, "lin_b": lin_b,
            "W_w": W_w, "W_b": W_b}, key


if __name__ == "__main__":
    key = jax.random.PRNGKey(0)

    # Two sub-graphs of 8 and 16 nodes -> nnodes = 24, nmatrix = 4.
    l_matrix = [8, 16]
    dim = 8
    k_top = 4

    pre_adj_list = []
    for n in l_matrix:
        key, sub = jax.random.split(key)
        pre_adj_list.append(jax.random.uniform(sub, (n, n), jnp.float32))

    params, key = make_params(key, l_matrix, dim)

    # One-time packing (hoisted out of the per-call path).
    packed, nnodes, c_pad = prepare_packed(params, pre_adj_list, dim)

    idx = jnp.arange(nnodes, dtype=jnp.int32)  # forward(idx): only its size matters
    assert idx.shape[0] == nnodes

    adj_pallas = multigraph_forward_pallas(
        packed["e1_aug"], packed["e2_aug"], packed["w_fused"],
        packed["p_pack"], packed["q_pack"],
        nnodes=nnodes, c_pad=c_pad, k=k_top)
    adj_pallas = jax.block_until_ready(adj_pallas)

    adj_ref = jax.block_until_ready(
        multigraph_forward_reference(params, pre_adj_list, k_top))

    assert adj_pallas.shape == (nnodes, nnodes)
    np.testing.assert_allclose(np.asarray(adj_pallas), np.asarray(adj_ref),
                               rtol=1e-5, atol=1e-5)
    print("KERNEL_OK")
</pallas_src>

<mosaic_0001>
module attributes {stable_mosaic.version = 11 : i64} {
  func.func @_fused_adj_kernel(%arg0: memref<24x36xf32, #tpu.memory_space<vmem>>, %arg1: memref<128x36xf32, #tpu.memory_space<vmem>>, %arg2: memref<36x32xf32, #tpu.memory_space<vmem>>, %arg3: memref<24x26xf32, #tpu.memory_space<vmem>>, %arg4: memref<128x26xf32, #tpu.memory_space<vmem>>, %arg5: memref<24x128xf32, #tpu.memory_space<vmem>>) attributes {dimension_semantics = [], scalar_prefetch = 0 : i64, scratch_operands = 0 : i64, tpu.core_type = #tpu.core_type<tc>} {
    %c0 = arith.constant 0 : index
    %c0_0 = arith.constant 0 : index
    %0 = vector.load %arg2[%c0, %c0_0] : memref<36x32xf32, #tpu.memory_space<vmem>>, vector<36x32xf32>
    %c0_1 = arith.constant 0 : index
    %c0_2 = arith.constant 0 : index
    %1 = vector.load %arg0[%c0_1, %c0_2] : memref<24x36xf32, #tpu.memory_space<vmem>>, vector<24x36xf32>
    %cst = arith.constant dense<0.000000e+00> : vector<24x32xf32>
    %2 = tpu.matmul %1, %0, %cst {dimension_numbers = #tpu.dot_dimension_numbers<[1], [0], [0], [1], [0, 0, 1, 1], [], []>} : vector<24x36xf32>, vector<36x32xf32>, vector<24x32xf32> -> vector<24x32xf32>
    %cst_3 = arith.constant 3.000000e+00 : f32
    %3 = vector.broadcast %cst_3 : f32 to vector<24x32xf32>
    %4 = arith.mulf %3, %2 : vector<24x32xf32>
    %5 = math.tanh %4 : vector<24x32xf32>
    %c0_4 = arith.constant 0 : index
    %c0_5 = arith.constant 0 : index
    %6 = vector.load %arg1[%c0_4, %c0_5] : memref<128x36xf32, #tpu.memory_space<vmem>>, vector<128x36xf32>
    %cst_6 = arith.constant dense<0.000000e+00> : vector<128x32xf32>
    %7 = tpu.matmul %6, %0, %cst_6 {dimension_numbers = #tpu.dot_dimension_numbers<[1], [0], [0], [1], [0, 0, 1, 1], [], []>} : vector<128x36xf32>, vector<36x32xf32>, vector<128x32xf32> -> vector<128x32xf32>
    %cst_7 = arith.constant 3.000000e+00 : f32
    %8 = vector.broadcast %cst_7 : f32 to vector<128x32xf32>
    %9 = arith.mulf %8, %7 : vector<128x32xf32>
    %10 = math.tanh %9 : vector<128x32xf32>
    %cst_8 = arith.constant dense<0.000000e+00> : vector<24x128xf32>
    %11 = tpu.matmul %5, %10, %cst_8 {dimension_numbers = #tpu.dot_dimension_numbers<[1], [1], [0], [0], [0, 0, 1, 0], [], []>} : vector<24x32xf32>, vector<128x32xf32>, vector<24x128xf32> -> vector<24x128xf32>
    %c0_9 = arith.constant 0 : index
    %c0_10 = arith.constant 0 : index
    %12 = vector.load %arg3[%c0_9, %c0_10] : memref<24x26xf32, #tpu.memory_space<vmem>>, vector<24x26xf32>
    %c0_11 = arith.constant 0 : index
    %c0_12 = arith.constant 0 : index
    %13 = vector.load %arg4[%c0_11, %c0_12] : memref<128x26xf32, #tpu.memory_space<vmem>>, vector<128x26xf32>
    %cst_13 = arith.constant dense<0.000000e+00> : vector<24x128xf32>
    %14 = tpu.matmul %12, %13, %cst_13 {dimension_numbers = #tpu.dot_dimension_numbers<[1], [1], [0], [0], [0, 0, 1, 0], [], []>} : vector<24x26xf32>, vector<128x26xf32>, vector<24x128xf32> -> vector<24x128xf32>
    %15 = arith.addf %11, %14 : vector<24x128xf32>
    %cst_14 = arith.constant 3.000000e+00 : f32
    %16 = vector.broadcast %cst_14 : f32 to vector<24x128xf32>
    %17 = arith.mulf %16, %15 : vector<24x128xf32>
    %18 = math.tanh %17 : vector<24x128xf32>
    %cst_15 = arith.constant 0.000000e+00 : f32
    %19 = vector.broadcast %cst_15 : f32 to vector<24x128xf32>
    %20 = arith.maximumf %18, %19 : vector<24x128xf32>
    %21 = tpu.iota {dimensions = array<i32: 1>} : vector<24x128xi32>
    %c24_i32 = arith.constant 24 : i32
    %22 = vector.broadcast %c24_i32 : i32 to vector<24x128xi32>
    %23 = arith.cmpi slt, %21, %22 : vector<24x128xi32>
    %cst_16 = arith.constant -1.000000e+30 : f32
    %24 = vector.broadcast %cst_16 : f32 to vector<24x128xf32>
    %25 = arith.select %23, %20, %24 : vector<24x128xi1>, vector<24x128xf32>
    %false = arith.constant false
    %26 = vector.broadcast %false : i1 to vector<24x128xi1>
    %cst_17 = arith.constant dense<0xFF800000> : vector<24xf32>
    %27 = vector.multi_reduction <maximumf>, %25, %cst_17 [1] : vector<24x128xf32> to vector<24xf32>
    %28 = vector.shape_cast %27 : vector<24xf32> to vector<24x1xf32>
    %29 = vector.broadcast %28 : vector<24x1xf32> to vector<24x128xf32>
    %30 = arith.cmpf oeq, %25, %29 : vector<24x128xf32>
    %c128_i32 = arith.constant 128 : i32
    %31 = vector.broadcast %c128_i32 : i32 to vector<24x128xi32>
    %32 = arith.select %30, %21, %31 : vector<24x128xi1>, vector<24x128xi32>
    %cst_18 = arith.constant dense<2147483647> : vector<24xi32>
    %33 = vector.multi_reduction <minsi>, %32, %cst_18 [1] : vector<24x128xi32> to vector<24xi32>
    %34 = vector.shape_cast %33 : vector<24xi32> to vector<24x1xi32>
    %35 = vector.broadcast %34 : vector<24x1xi32> to vector<24x128xi32>
    %36 = arith.cmpi eq, %21, %35 : vector<24x128xi32>
    %37 = arith.ori %26, %36 : vector<24x128xi1>
    %cst_19 = arith.constant -1.000000e+30 : f32
    %38 = vector.broadcast %cst_19 : f32 to vector<24x128xf32>
    %39 = arith.select %36, %38, %25 : vector<24x128xi1>, vector<24x128xf32>
    %cst_20 = arith.constant dense<0xFF800000> : vector<24xf32>
    %40 = vector.multi_reduction <maximumf>, %39, %cst_20 [1] : vector<24x128xf32> to vector<24xf32>
    %41 = vector.shape_cast %40 : vector<24xf32> to vector<24x1xf32>
    %42 = vector.broadcast %41 : vector<24x1xf32> to vector<24x128xf32>
    %43 = arith.cmpf oeq, %39, %42 : vector<24x128xf32>
    %c128_i32_21 = arith.constant 128 : i32
    %44 = vector.broadcast %c128_i32_21 : i32 to vector<24x128xi32>
    %45 = arith.select %43, %21, %44 : vector<24x128xi1>, vector<24x128xi32>
    %cst_22 = arith.constant dense<2147483647> : vector<24xi32>
    %46 = vector.multi_reduction <minsi>, %45, %cst_22 [1] : vector<24x128xi32> to vector<24xi32>
    %47 = vector.shape_cast %46 : vector<24xi32> to vector<24x1xi32>
    %48 = vector.broadcast %47 : vector<24x1xi32> to vector<24x128xi32>
    %49 = arith.cmpi eq, %21, %48 : vector<24x128xi32>
    %50 = arith.ori %37, %49 : vector<24x128xi1>
    %cst_23 = arith.constant -1.000000e+30 : f32
    %51 = vector.broadcast %cst_23 : f32 to vector<24x128xf32>
    %52 = arith.select %49, %51, %39 : vector<24x128xi1>, vector<24x128xf32>
    %cst_24 = arith.constant dense<0xFF800000> : vector<24xf32>
    %53 = vector.multi_reduction <maximumf>, %52, %cst_24 [1] : vector<24x128xf32> to vector<24xf32>
    %54 = vector.shape_cast %53 : vector<24xf32> to vector<24x1xf32>
    %55 = vector.broadcast %54 : vector<24x1xf32> to vector<24x128xf32>
    %56 = arith.cmpf oeq, %52, %55 : vector<24x128xf32>
    %c128_i32_25 = arith.constant 128 : i32
    %57 = vector.broadcast %c128_i32_25 : i32 to vector<24x128xi32>
    %58 = arith.select %56, %21, %57 : vector<24x128xi1>, vector<24x128xi32>
    %cst_26 = arith.constant dense<2147483647> : vector<24xi32>
    %59 = vector.multi_reduction <minsi>, %58, %cst_26 [1] : vector<24x128xi32> to vector<24xi32>
    %60 = vector.shape_cast %59 : vector<24xi32> to vector<24x1xi32>
    %61 = vector.broadcast %60 : vector<24x1xi32> to vector<24x128xi32>
    %62 = arith.cmpi eq, %21, %61 : vector<24x128xi32>
    %63 = arith.ori %50, %62 : vector<24x128xi1>
    %cst_27 = arith.constant -1.000000e+30 : f32
    %64 = vector.broadcast %cst_27 : f32 to vector<24x128xf32>
    %65 = arith.select %62, %64, %52 : vector<24x128xi1>, vector<24x128xf32>
    %cst_28 = arith.constant dense<0xFF800000> : vector<24xf32>
    %66 = vector.multi_reduction <maximumf>, %65, %cst_28 [1] : vector<24x128xf32> to vector<24xf32>
    %67 = vector.shape_cast %66 : vector<24xf32> to vector<24x1xf32>
    %68 = vector.broadcast %67 : vector<24x1xf32> to vector<24x128xf32>
    %69 = arith.cmpf oeq, %65, %68 : vector<24x128xf32>
    %c128_i32_29 = arith.constant 128 : i32
    %70 = vector.broadcast %c128_i32_29 : i32 to vector<24x128xi32>
    %71 = arith.select %69, %21, %70 : vector<24x128xi1>, vector<24x128xi32>
    %cst_30 = arith.constant dense<2147483647> : vector<24xi32>
    %72 = vector.multi_reduction <minsi>, %71, %cst_30 [1] : vector<24x128xi32> to vector<24xi32>
    %73 = vector.shape_cast %72 : vector<24xi32> to vector<24x1xi32>
    %74 = vector.broadcast %73 : vector<24x1xi32> to vector<24x128xi32>
    %75 = arith.cmpi eq, %21, %74 : vector<24x128xi32>
    %76 = arith.ori %63, %75 : vector<24x128xi1>
    %cst_31 = arith.constant 0.000000e+00 : f32
    %77 = vector.broadcast %cst_31 : f32 to vector<24x128xf32>
    %78 = arith.select %76, %20, %77 : vector<24x128xi1>, vector<24x128xf32>
    %c0_32 = arith.constant 0 : index
    %c0_33 = arith.constant 0 : index
    %79 = vector.load %arg5[%c0_32, %c0_33] : memref<24x128xf32, #tpu.memory_space<vmem>>, vector<24x128xf32>
    tpu.vector_store %arg5[%c0_32, %c0_33], %78 {strides = array<i32>} : memref<24x128xf32, #tpu.memory_space<vmem>>, vector<24x128xf32>,
    return
  }
}

</mosaic_0001>

<bundles_post_ra>
// kernel: multigraph_forward_pallas.1
= control target key start
LH: loop header
LB: loop body
LE: loop exit
PB: predicated region body
PF: predicated region fallthrough
CT: control target
= control target key end

     0   :  { %vm29_vm0 = vcmask 293888   ;;  %v1364_v6 = vmov 0.0|0.0   ;;  %vm1365_vm1 = vmmov 0   ;;  %v1366_v8 = vmov 0.0   ;;  %s1786_s0 = inlined_call_operand.vmem [shape: f32[24,36], index: 0, kind: input, shape index: {}]   ;;  %s1787_s1 = inlined_call_operand.vmem [shape: f32[128,36], index: 1, kind: input, shape index: {}]   ;;  %s1788_s2 = inlined_call_operand.vmem [shape: f32[36,32], index: 2, kind: input, shape index: {}]   ;;  %s1789_s3 = inlined_call_operand.vmem [shape: f32[24,26], index: 3, kind: input, shape index: {}]   ;;  %s1790_s4 = inlined_call_operand.vmem [shape: f32[128,26], index: 4, kind: input, shape index: {}]   ;;  %s1791_s5 = inlined_call_operand.hbm [shape: f32[24,128], index: 5, kind: output, shape index: {}]  }
   0x1   :  { %v21_v0 = vld [vmem:[%s1788_s2] sm:$0xff]  ;;  %v22_v1 = vld [vmem:[%s1788_s2 + $0x8] sm:$0xff]  ;;  %v23_v2 = vld [vmem:[%s1788_s2 + $0x10] sm:$0xff]  ;;  %1209 = vmatprep.subr.bf16.mxu0 %v1364_v6  ;;  %1084 = vmatprep.mubr.msk.f32.mxu0 %vm1365_vm1, %v1366_v8  ;;  %vm39_vm2 = vcmask 1043456  }
   0x2   :  { %v1210_v3 = vpack.c.bf16 %v22_v1, %v21_v0  ;;  %v24_v4 = vld [vmem:[%s1788_s2 + $0x18] sm:$0xff]  ;;  %v129_v5 = vld [vmem:[%s1787_s1] sm:$0xff] }
   0x3   :  { %v1213_v7 = vpack.c.bf16 %v24_v4, %v23_v2  ;;  %1103 = vmatprep.mubr.msk.f32.mxu1 %vm29_vm0, %v129_v5  ;;  %v25_v9 = vld [vmem:[%s1788_s2 + $0x20] sm:$0xf] }
   0x4   :  { %1216 = vmatprep.subr.bf16.mxu1 %v1210_v3  ;;  %1211 = vmatpush3.bf16.msra.mxu0 %v1210_v3 }
   0x5   :  { %1218 = vmatpush3.bf16.msra.mxu1 %v1210_v3  ;;  %1212 = vmatprep.subr.bf16.mxu0 %v1364_v6 }
   0x6   :  { %1220 = vmatprep.subr.bf16.mxu1 %v1213_v7 }
   0x8   :  { %1214 = vmatpush3.bf16.msra.mxu0 %v1213_v7 }
   0x9   :  { %1222 = vmatpush3.bf16.msra.mxu1 %v1213_v7  ;;  %1082 = vmatprep.subr.mxu0 %v1366_v8 }
   0xa   :  { %10 = vsyncpa [#allocation3], 0  ;;  %1101 = vmatprep.subr.msk.mxu1 %vm39_vm2, %v25_v9  ;;  %v26_v10 = vld [vmem:[%s1786_s0] sm:$0xff]  ;;  %v130_v11 = vld [vmem:[%s1787_s1 + $0x8] sm:$0xff]  ;;  %vm389_vm3 = vcmask 211968   ;;  %vm527_vm5 = vcmask 261120  }
   0xb   :  { %v131_v12 = vld [vmem:[%s1787_s1 + $0x10] sm:$0xff]  ;;  %v27_v13 = vld [vmem:[%s1786_s0 + $0x8] sm:$0xff]  ;;  %v132_v14 = vld [vmem:[%s1787_s1 + $0x18] sm:$0xff] }
   0xc   :  { %1083 = vmatpush3.msk.msra.mxu0 %vm39_vm2, %v25_v9  ;;  %v133_v15 = vld [vmem:[%s1787_s1 + $0x20] sm:$0xff]  ;;  %v28_v16 = vld [vmem:[%s1786_s0 + $0x10] sm:$0xff]  ;;  %v134_v17 = vld [vmem:[%s1787_s1 + $0x28] sm:$0xff] }
   0xd   :  { %1102 = vmatpush3.msk.msra.mxu1 %vm39_vm2, %v25_v9  ;;  %1085 = vmatmul.mubr.msk.f32.vlgmr.msra.gmra.mrb[0].mxu0 %vm29_vm0, %v26_v10  ;;  %v135_v18 = vld [vmem:[%s1787_s1 + $0x30] sm:$0xff]  ;;  %v136_v19 = vld [vmem:[%s1787_s1 + $0x38] sm:$0xff]  ;;  %v137_v20 = vld [vmem:[%s1787_s1 + $0x40] sm:$0xff] }
   0xe   :  { %1104 = vmatmul.mubr.msk.f32.vlgmr.msra.gmra.mrb[0].mxu1 %vm29_vm0, %v130_v11  ;;  %1087 = vmatprep.mubr.msk.f32.mxu0 %vm1365_vm1, %v1366_v8  ;;  %v138_v21 = vld [vmem:[%s1787_s1 + $0x48] sm:$0xff]  ;;  %v139_v22 = vld [vmem:[%s1787_s1 + $0x50] sm:$0xff]  ;;  %v140_v23 = vld [vmem:[%s1787_s1 + $0x58] sm:$0xff] }
   0xf   :  { %1106 = vmatprep.mubr.msk.f32.mxu1 %vm29_vm0, %v131_v12  ;;  %1223 = vmatprep.subr.bf16.mxu1 %v1364_v6  ;;  %v141_v24 = vld [vmem:[%s1787_s1 + $0x60] sm:$0xff]  ;;  %v142_v25 = vld [vmem:[%s1787_s1 + $0x68] sm:$0xff]  ;;  %v143_v26 = vld [vmem:[%s1787_s1 + $0x70] sm:$0xff] }
  0x10   :  { %1255 = vmatprep.subr.bf16.mxu0 %v1364_v6  ;;  %v144_v27 = vld [vmem:[%s1787_s1 + $0x78] sm:$0xff]  ;;  %v373_v28 = vld [vmem:[%s1790_s4] sm:$0xff]  ;;  %v374_v29 = vld [vmem:[%s1790_s4 + $0x8] sm:$0xff] }
  0x11   :  { %1088 = vmatmul.mubr.msk.f32.gmra.mrb[2].mxu0 %vm29_vm0, %v27_v13  ;;  %v1224_v30 = vpack.c.bf16 %v374_v29, %v373_v28  ;;  %vm1514_vm4 = vmpackc.low %vm389_vm3, %vm389_vm3  ;;  %v375_v32 = vld [vmem:[%s1790_s4 + $0x10] sm:$0xff]  ;;  %v376_v33 = vld [vmem:[%s1790_s4 + $0x18] sm:$0xff] }
  0x12   :  { %1107 = vmatmul.mubr.msk.f32.gmra.mrb[2].mxu1 %vm29_vm0, %v132_v14  ;;  %1090 = vmatprep.mubr.msk.f32.mxu0 %vm1365_vm1, %v1366_v8  ;;  %v1228_v34 = vpack.c.bf16 %v376_v33, %v375_v32  ;;  %v377_v35 = vld [vmem:[%s1790_s4 + $0x20] sm:$0xff]  ;;  %v378_v36 = vld [vmem:[%s1790_s4 + $0x28] sm:$0xff]  ;;  %v379_v38 = vld [vmem:[%s1790_s4 + $0x30] sm:$0xff] }
  0x13   :  { %1109 = vmatprep.mubr.msk.f32.mxu1 %vm29_vm0, %v133_v15  ;;  %v1232_v37 = vpack.c.bf16 %v378_v36, %v377_v35  ;;  %v380_v39 = vld [vmem:[%s1790_s4 + $0x38] sm:$0xff]  ;;  %v381_v41 = vld [vmem:[%s1790_s4 + $0x40] sm:$0xff]  ;;  %v382_v42 = vld [vmem:[%s1790_s4 + $0x48] sm:$0xff] }
  0x14   :  { %1226 = vmatpush3.bf16.xpose.msk.msra.mxu1 %vm1514_vm4, %v1224_v30  ;;  %v1236_v40 = vpack.c.bf16 %v380_v39, %v379_v38  ;;  %v1240_v43 = vpack.c.bf16 %v382_v42, %v381_v41  ;;  %v383_v44 = vld [vmem:[%s1790_s4 + $0x50] sm:$0xff]  ;;  %v384_v45 = vld [vmem:[%s1790_s4 + $0x58] sm:$0xff]  ;;  %v385_v47 = vld [vmem:[%s1790_s4 + $0x60] sm:$0xff] }
  0x15   :  { %1091 = vmatmul.mubr.msk.f32.gmra.mrb[4].mxu0 %vm29_vm0, %v28_v16  ;;  %1227 = vmatprep.subr.bf16.mxu1 %v1364_v6  ;;  %v1244_v46 = vpack.c.bf16 %v384_v45, %v383_v44  ;;  %v386_v48 = vld [vmem:[%s1790_s4 + $0x68] sm:$0xff]  ;;  %v387_v50 = vld [vmem:[%s1790_s4 + $0x70] sm:$0xff]  ;;  %v388_v51 = vld [vmem:[%s1790_s4 + $0x78] sm:$0xff] }
  0x16   :  { %1110 = vmatmul.mubr.msk.f32.gmra.mrb[4].mxu1 %vm29_vm0, %v134_v17  ;;  %1200 = vmatprep.mubr.msk.f32.mxu0 %vm1365_vm1, %v1366_v8  ;;  %v1248_v49 = vpack.c.bf16 %v386_v48, %v385_v47  ;;  %v1252_v52 = vpack.c.bf16 %v388_v51, %v387_v50  ;;  %v370_v53 = vld [vmem:[%s1789_s3] sm:$0xff]  ;;  %v371_v54 = vld [vmem:[%s1789_s3 + $0x8] sm:$0xff]  ;;  %v372_v55 = vld [vmem:[%s1789_s3 + $0x10] sm:$0xff]  ;;  %s1367_s3 = smov [#allocation2]  }
  0x17   :  { %1112 = vmatprep.mubr.msk.f32.mxu1 %vm29_vm0, %v135_v18  ;;  %vm1607_vm6 = vmpackc.low %vm527_vm5, %vm527_vm5  ;;  %s937_s21 = sshll.u32 %s1367_s3, 4  ;;  %s938_s21 = int_to_ptr.vmem [resolvable:$true] %s937_s21 }
  0x18   :  { %s1340_s0 = scalar_lea.vmem %s938_s21, 384  ;;  %p1345_p1 = scmp.lt.s32.totalorder %s938_s21, %s938_s21 }
  0x19   :  { %p1341_p0 = scmp.ne.s32.totalorder %s938_s21, %s1340_s0  ;;  %p1346_p2 = scmp.lt.s32.totalorder %s1340_s0, %s1340_s0 }
  0x1a   :  { %1113 = vmatmul.mubr.msk.f32.gmra.mrb[6].mxu1 %vm29_vm0, %v136_v19 }
  0x1b   :  { %1115 = vmatprep.mubr.msk.f32.mxu1 %vm29_vm0, %v137_v20  ;;  %p1347_p3 = por %p1346_p2, %p1345_p1 }
  0x1c   :  { %1230 = vmatpush3.bf16.xpose.msk.msra.mxu1 %vm1514_vm4, %v1228_v34 }
  0x1d   :  { %1231 = vmatprep.subr.bf16.mxu1 %v1364_v6  ;;  %p1348_p4 = pnand %p1347_p3, %p1341_p0 }
  0x1e   :  { %1116 = vmatmul.mubr.msk.f32.gmra.mrb[8].mxu1 %vm29_vm0, %v138_v21 }
  0x1f   :  { %1118 = vmatprep.mubr.msk.f32.mxu1 %vm29_vm0, %v139_v22 }
  0x22   :  { %1119 = vmatmul.mubr.msk.f32.gmra.mrb[10].mxu1 %vm29_vm0, %v140_v23 }
  0x23   :  { %1121 = vmatprep.mubr.msk.f32.mxu1 %vm29_vm0, %v141_v24 }
  0x24   :  { %1234 = vmatpush3.bf16.xpose.msk.msra.mxu1 %vm1514_vm4, %v1232_v37 }
  0x25   :  { %1235 = vmatprep.subr.bf16.mxu1 %v1364_v6 }
  0x26   :  { %1122 = vmatmul.mubr.msk.f32.gmra.mrb[12].mxu1 %vm29_vm0, %v142_v25 }
  0x27   :  { %1124 = vmatprep.mubr.msk.f32.mxu1 %vm29_vm0, %v143_v26 }
  0x2a   :  { %1125 = vmatmul.mubr.msk.f32.gmra.mrb[14].mxu1 %vm29_vm0, %v144_v27 }
  0x2b   :  { %1159 = vmatprep.mubr.msk.f32.mxu1 %vm1365_vm1, %v1366_v8 }
  0x2c   :  { %1238 = vmatpush3.bf16.xpose.msk.msra.mxu1 %vm1514_vm4, %v1236_v40 }
  0x2d   :  { %1239 = vmatprep.subr.bf16.mxu1 %v1364_v6 }
  0x34   :  { %1242 = vmatpush3.bf16.xpose.msk.msra.mxu1 %vm1514_vm4, %v1240_v43 }
  0x35   :  { %1243 = vmatprep.subr.bf16.mxu1 %v1364_v6 }
  0x3c   :  { %1246 = vmatpush3.bf16.xpose.msk.msra.mxu1 %vm1514_vm4, %v1244_v46 }
  0x3d   :  { %1247 = vmatprep.subr.bf16.mxu1 %v1364_v6 }
  0x44   :  { %1250 = vmatpush3.bf16.xpose.msk.msra.mxu1 %vm1514_vm4, %v1248_v49 }
  0x45   :  { %1251 = vmatprep.subr.bf16.mxu1 %v1364_v6 }
  0x4c   :  { %1254 = vmatpush3.bf16.xpose.msk.msra.mxu1 %vm1514_vm4, %v1252_v52 }
  0x53   :  { %1160 = vmatmul.mubr.msk.f32.vlgmr.msra.gmra.mrb[16].mxu1 %vm389_vm3, %v370_v53 }
  0x54   :  { %1162 = vmatprep.mubr.msk.f32.mxu1 %vm1365_vm1, %v1366_v8 }
  0x57   :  { %1163 = vmatmul.mubr.msk.f32.gmra.mrb[18].mxu1 %vm389_vm3, %v371_v54 }
  0x58   :  { %1165 = vmatprep.mubr.msk.f32.mxu1 %vm1365_vm1, %v1366_v8 }
  0x5b   :  { %1166 = vmatmul.mubr.msk.f32.gmra.mrb[20].mxu1 %vm389_vm3, %v372_v55 }
  0xe0   :  { %v1599_v56 = vpop.f32.mrb[0].mxu0 }
  0xe1   :  { %v1105_v57 = vpop.f32.mrb[0].mxu1  ;;  %v1086_v58 = vpop.f32.mrb[1].mxu0 }
  0xe2   :  { %v339_v59 = vmul.f32 3.0, %v1105_v57  ;;  %v259_v60 = vpop.f32.mrb[1].mxu1  ;;  %v123_v58 = vmul.f32 3.0, %v1599_v56 }
  0xe3   :  { %v338_v61 = vmul.f32 3.0, %v259_v60 }
  0xe4   :  { %1296 = vtanh.f32 %v339_v59  ;;  %v1601_v62 = vpop.f32.mrb[2].mxu0 }
  0xe5   :  { %1298 = vtanh.f32 %v338_v61  ;;  %v1108_v63 = vpop.f32.mrb[2].mxu1  ;;  %v1089_v0 = vpop.f32.mrb[3].mxu0  ;;  %v124_v59 = vmul.f32 3.0, %v1601_v62 }
  0xe6   :  { %v341_v1 = vmul.f32 3.0, %v1108_v63  ;;  %v269_v2 = vpop.f32.mrb[3].mxu1 }
  0xe7   :  { %v340_v3 = vmul.f32 3.0, %v269_v2 }
  0xe8   :  { %1300 = vtanh.f32 %v341_v1  ;;  %v1603_v4 = vpop.f32.mrb[4].mxu0 }
  0xe9   :  { %1302 = vtanh.f32 %v340_v3  ;;  %v1111_v5 = vpop.f32.mrb[4].mxu1  ;;  %v1092_v7 = vpop.f32.mrb[5].mxu0  ;;  %v125_v60 = vmul.f32 3.0, %v1603_v4 }
  0xea   :  { %v343_v9 = vmul.f32 3.0, %v1111_v5  ;;  %v279_v10 = vpop.f32.mrb[5].mxu1 }
  0xeb   :  { %v342_v11 = vmul.f32 3.0, %v279_v10 }
  0xec   :  { %1304 = vtanh.f32 %v343_v9 }
  0xed   :  { %1306 = vtanh.f32 %v342_v11  ;;  %v1114_v12 = vpop.f32.mrb[6].mxu1 }
  0xee   :  { %v1297_v13 = vpop.eup %1296  ;;  %v345_v14 = vmul.f32 3.0, %v1114_v12  ;;  %v289_v15 = vpop.f32.mrb[7].mxu1 }
  0xef   :  { %v1299_v16 = vpop.eup %1298  ;;  %v344_v18 = vmul.f32 3.0, %v289_v15 }
  0xf0   :  { %v1256_v19 = vpack.c.bf16 %v1297_v13, %v1299_v16  ;;  %1308 = vtanh.f32 %v345_v14  ;;  %v674_v14 = vlaneseq }
  0xf1   :  { %1310 = vtanh.f32 %v344_v18  ;;  %v1117_v20 = vpop.f32.mrb[8].mxu1 }
  0xf2   :  { %v1301_v21 = vpop.eup %1300  ;;  %1258 = vmatpush3.bf16.xpose.msk.msra.mxu0 %vm1607_vm6, %v1256_v19  ;;  %v347_v22 = vmul.f32 3.0, %v1117_v20  ;;  %v299_v23 = vpop.f32.mrb[9].mxu1  ;;  %v1644_v18 = vand.u32 127, %v674_v14 }
  0xf3   :  { %v1303_v24 = vpop.eup %1302  ;;  %1259 = vmatprep.subr.bf16.mxu0 %v1364_v6  ;;  %v346_v25 = vmul.f32 3.0, %v299_v23 }
  0xf4   :  { %v1260_v26 = vpack.c.bf16 %v1301_v21, %v1303_v24  ;;  %1312 = vtanh.f32 %v347_v22  ;;  %vm676_vm7 = vcmp.lt.s32.totalorder %v1644_v18, 24 }
  0xf5   :  { %1314 = vtanh.f32 %v346_v25  ;;  %v1120_v27 = vpop.f32.mrb[10].mxu1 }
  0xf6   :  { %v1305_v28 = vpop.eup %1304  ;;  %v349_v29 = vmul.f32 3.0, %v1120_v27  ;;  %v309_v30 = vpop.f32.mrb[11].mxu1 }
  0xf7   :  { %v1307_v31 = vpop.eup %1306  ;;  %v348_v32 = vmul.f32 3.0, %v309_v30 }
  0xf8   :  { %v1264_v33 = vpack.c.bf16 %v1305_v28, %v1307_v31  ;;  %1316 = vtanh.f32 %v349_v29 }
  0xf9   :  { %1318 = vtanh.f32 %v348_v32  ;;  %v1123_v34 = vpop.f32.mrb[12].mxu1 }
  0xfa   :  { %v1309_v35 = vpop.eup %1308  ;;  %1262 = vmatpush3.bf16.xpose.msk.msra.mxu0 %vm1607_vm6, %v1260_v26  ;;  %v351_v36 = vmul.f32 3.0, %v1123_v34  ;;  %v319_v37 = vpop.f32.mrb[13].mxu1 }
  0xfb   :  { %v1311_v38 = vpop.eup %1310  ;;  %1263 = vmatprep.subr.bf16.mxu0 %v1364_v6  ;;  %v350_v39 = vmul.f32 3.0, %v319_v37 }
  0xfc   :  { %v1268_v40 = vpack.c.bf16 %v1309_v35, %v1311_v38  ;;  %1320 = vtanh.f32 %v351_v36 }
  0xfd   :  { %1322 = vtanh.f32 %v350_v39  ;;  %v1126_v41 = vpop.f32.mrb[14].mxu1 }
  0xfe   :  { %v1313_v42 = vpop.eup %1312  ;;  %v353_v43 = vmul.f32 3.0, %v1126_v41  ;;  %v329_v44 = vpop.f32.mrb[15].mxu1 }
  0xff   :  { %v1315_v45 = vpop.eup %1314  ;;  %v352_v46 = vmul.f32 3.0, %v329_v44 }
 0x100   :  { %v1272_v47 = vpack.c.bf16 %v1313_v42, %v1315_v45  ;;  %1324 = vtanh.f32 %v353_v43 }
 0x101   :  { %1326 = vtanh.f32 %v352_v46 }
 0x102   :  { %v1317_v48 = vpop.eup %1316  ;;  %1266 = vmatpush3.bf16.xpose.msk.msra.mxu0 %vm1607_vm6, %v1264_v33  ;;  %1328 = vtanh.f32 %v123_v58 }
 0x103   :  { %v1319_v49 = vpop.eup %1318  ;;  %1267 = vmatprep.subr.bf16.mxu0 %v1364_v6  ;;  %1330 = vtanh.f32 %v124_v59 }
 0x104   :  { %v1276_v50 = vpack.c.bf16 %v1317_v48, %v1319_v49  ;;  %1332 = vtanh.f32 %v125_v60 }
 0x106   :  { %v1321_v51 = vpop.eup %1320 }
 0x107   :  { %v1323_v52 = vpop.eup %1322 }
 0x108   :  { %v1280_v53 = vpack.c.bf16 %v1321_v51, %v1323_v52 }
 0x10a   :  { %v1325_v54 = vpop.eup %1324  ;;  %1270 = vmatpush3.bf16.xpose.msk.msra.mxu0 %vm1607_vm6, %v1268_v40 }
 0x10b   :  { %v1327_v55 = vpop.eup %1326  ;;  %1271 = vmatprep.subr.bf16.mxu0 %v1364_v6 }
 0x10c   :  { %v1284_v57 = vpack.c.bf16 %v1325_v54, %v1327_v55  ;;  %v1329_v61 = vpop.eup %1328 }
 0x10d   :  { %v1331_v63 = vpop.eup %1330 }
 0x112   :  { %1274 = vmatpush3.bf16.xpose.msk.msra.mxu0 %vm1607_vm6, %v1272_v47 }
 0x113   :  { %1275 = vmatprep.subr.bf16.mxu0 %v1364_v6 }
 0x11a   :  { %1278 = vmatpush3.bf16.xpose.msk.msra.mxu0 %vm1607_vm6, %v1276_v50 }
 0x11b   :  { %1279 = vmatprep.subr.bf16.mxu0 %v1364_v6 }
 0x122   :  { %1282 = vmatpush3.bf16.xpose.msk.msra.mxu0 %vm1607_vm6, %v1280_v53 }
 0x123   :  { %1283 = vmatprep.subr.bf16.mxu0 %v1364_v6  ;;  %v1333_v6 = vpop.eup %1332 }
 0x126   :  { %v513_v56 = vpop.f32.mrb[16].mxu1 }
 0x127   :  { %v1161_v62 = vpop.f32.mrb[17].mxu1 }
 0x12a   :  { %1286 = vmatpush3.bf16.xpose.msk.msra.mxu0 %vm1607_vm6, %v1284_v57  ;;  %v518_v0 = vpop.f32.mrb[18].mxu1 }
 0x12b   :  { %v1164_v1 = vpop.f32.mrb[19].mxu1 }
 0x12e   :  { %v523_v2 = vpop.f32.mrb[20].mxu1 }
 0x12f   :  { %v1167_v3 = vpop.f32.mrb[21].mxu1 }
 0x131   :  { %1201 = vmatmul.mubr.msk.f32.vlgmr.msra.gmra.mrb[6].mxu0 %vm527_vm5, %v1329_v61 }
 0x132   :  { %1203 = vmatprep.mubr.msk.f32.mxu0 %vm1365_vm1, %v1366_v8 }
 0x135   :  { %1204 = vmatmul.mubr.msk.f32.gmra.mrb[8].mxu0 %vm527_vm5, %v1331_v63 }
 0x136   :  { %1206 = vmatprep.mubr.msk.f32.mxu0 %vm1365_vm1, %v1366_v8 }
 0x139   :  { %1207 = vmatmul.mubr.msk.f32.gmra.mrb[10].mxu0 %vm527_vm5, %v1333_v6 }
 0x204   :  { %v651_v4 = vpop.f32.mrb[6].mxu0 }
 0x205   :  { %v652_v5 = vadd.f32 %v651_v4, %v513_v56  ;;  %v1202_v7 = vpop.f32.mrb[7].mxu0 }
 0x207   :  { %v665_v9 = vmul.f32 3.0, %v652_v5 }
 0x208   :  { %v656_v10 = vpop.f32.mrb[8].mxu0 }
 0x209   :  { %1334 = vtanh.f32 %v665_v9  ;;  %v657_v11 = vadd.f32 %v656_v10, %v518_v0  ;;  %v1205_v12 = vpop.f32.mrb[9].mxu0 }
 0x20b   :  { %v666_v13 = vmul.f32 3.0, %v657_v11 }
 0x20c   :  { %v661_v15 = vpop.f32.mrb[10].mxu0 }
 0x20d   :  { %1336 = vtanh.f32 %v666_v13  ;;  %v662_v8 = vadd.f32 %v661_v15, %v523_v2  ;;  %v1208_v16 = vpop.f32.mrb[11].mxu0 }
 0x20f   :  { %v667_v17 = vmul.f32 3.0, %v662_v8 }
 0x211   :  { %1338 = vtanh.f32 %v667_v17 }
 0x213   :  { %v1646_v19 = vpop.eup %1334 }
 0x214   :  { %v671_v20 = vmax.f32 %v1646_v19, 0.0 }
 0x216   :  { %v677_v21 = vsel %vm676_vm7, %v671_v20, -1e+30 }
 0x217   :  { %v1652_v22 = vpop.eup %1336  ;;  %680 = vmax.xlane.f32.xlu0 %v677_v21 }
 0x218   :  { %v672_v23 = vmax.f32 %v1652_v22, 0.0 }
 0x21a   :  { %v678_v24 = vsel %vm676_vm7, %v672_v23, -1e+30 }
 0x21b   :  { %v1657_v25 = vpop.eup %1338  ;;  %682 = vmax.xlane.f32.xlu0 %v678_v24 }
 0x21c   :  { %v673_v26 = vmax.f32 %v1657_v25, 0.0 }
 0x21e   :  { %v679_v27 = vsel %vm676_vm7, %v673_v26, -1e+30 }
 0x21f   :  { %684 = vmax.xlane.f32.xlu1 %v679_v27 }
 0x2a4   :  { %v681_v28 = vpop.xlane.xlu0 %680 }
 0x2a5   :  { %vm686_vm8 = vcmp.eq.f32.partialorder %v677_v21, %v681_v28 }
 0x2a6   :  { %v689_v29 = vsel %vm686_vm8, %v1644_v18, 128 }
 0x2a7   :  { %v693_v30 = vshra.s32 %v689_v29, 16  ;;  %v692_v40 = vand.u32 65535, %v689_v29 }
 0x2a8   :  { %v683_v31 = vpop.xlane.xlu0 %682 }
 0x2a9   :  { %vm687_vm9 = vcmp.eq.f32.partialorder %v678_v24, %v683_v31  ;;  %v695_v32 = vcvt.s32.f32 %v693_v30  ;;  %v694_v43 = vcvt.s32.f32 %v692_v40 }
 0x2aa   :  { %v690_v33 = vsel %vm687_vm9, %v1644_v18, 128 }
 0x2ab   :  { %696 = vmin.xlane.f32.xlu1 %v695_v32  ;;  %v707_v34 = vshra.s32 %v690_v33, 16  ;;  %v706_v41 = vand.u32 65535, %v690_v33 }
 0x2ac   :  { %v685_v35 = vpop.xlane.xlu1 %684 }
 0x2ad   :  { %vm688_vm10 = vcmp.eq.f32.partialorder %v679_v27, %v685_v35  ;;  %v709_v36 = vcvt.s32.f32 %v707_v34  ;;  %v708_v47 = vcvt.s32.f32 %v706_v41 }
 0x2ae   :  { %v691_v37 = vsel %vm688_vm10, %v1644_v18, 128 }
 0x2af   :  { %710 = vmin.xlane.f32.xlu0 %v709_v36  ;;  %v721_v38 = vshra.s32 %v691_v37, 16  ;;  %v720_v45 = vand.u32 65535, %v691_v37 }
 0x2b1   :  { %v723_v39 = vcvt.s32.f32 %v721_v38  ;;  %v722_v50 = vcvt.s32.f32 %v720_v45 }
 0x2b3   :  { %724 = vmin.xlane.f32.xlu1 %v723_v39 }
 0x338   :  { %v697_v42 = vpop.xlane.xlu1 %696 }
 0x339   :  { %vm698_vm11 = vcmp.eq.f32.partialorder %v695_v32, %v697_v42  ;;  %v703_v52 = vcvt.f32.s32 %v697_v42 }
 0x33a   :  { %v699_v44 = vsel %vm698_vm11, %v694_v43, inf }
 0x33b   :  { %700 = vmin.xlane.f32.xlu0 %v699_v44  ;;  %v704_v54 = vshll.u32 %v703_v52, 16 }
 0x33c   :  { %v711_v46 = vpop.xlane.xlu0 %710 }
 0x33d   :  { %vm712_vm12 = vcmp.eq.f32.partialorder %v709_v36, %v711_v46  ;;  %v717_v55 = vcvt.f32.s32 %v711_v46 }
 0x33e   :  { %v713_v48 = vsel %vm712_vm12, %v708_v47, inf }
 0x33f   :  { %714 = vmin.xlane.f32.xlu1 %v713_v48  ;;  %v718_v60 = vshll.u32 %v717_v55, 16 }
 0x340   :  { %v725_v49 = vpop.xlane.xlu1 %724 }
 0x341   :  { %vm726_vm13 = vcmp.eq.f32.partialorder %v723_v39, %v725_v49  ;;  %v731_v61 = vcvt.f32.s32 %v725_v49 }
 0x342   :  { %v727_v51 = vsel %vm726_vm13, %v722_v50, inf }
 0x343   :  { %728 = vmin.xlane.f32.xlu0 %v727_v51  ;;  %v732_v0 = vshll.u32 %v731_v61, 16 }
 0x3c8   :  { %v701_v53 = vpop.xlane.xlu0 %700 }
 0x3c9   :  { %v702_v57 = vcvt.f32.s32 %v701_v53 }
 0x3cb   :  { %v1665_v58 = vadd.s32 %v704_v54, %v702_v57 }
 0x3cc   :  { %v715_v59 = vpop.xlane.xlu1 %714 }
 0x3cd   :  { %v716_v63 = vcvt.f32.s32 %v715_v59  ;;  %vm734_vm14 = vcmp.eq.s32.totalorder %v1644_v18, %v1665_v58 }
 0x3ce   :  { %v737_v6 = vsel %vm734_vm14, -1e+30, %v677_v21 }
 0x3cf   :  { %v1672_v56 = vadd.s32 %v718_v60, %v716_v63  ;;  %740 = vmax.xlane.f32.xlu1 %v737_v6 }
 0x3d0   :  { %v729_v62 = vpop.xlane.xlu0 %728 }
 0x3d1   :  { %v730_v1 = vcvt.f32.s32 %v729_v62  ;;  %vm735_vm15 = vcmp.eq.s32.totalorder %v1644_v18, %v1672_v56 }
 0x3d2   :  { %v738_v2 = vsel %vm735_vm15, -1e+30, %v678_v24 }
 0x3d3   :  { %v1679_v3 = vadd.s32 %v732_v0, %v730_v1  ;;  %742 = vmax.xlane.f32.xlu0 %v738_v2 }
 0x3d5   :  { %vm736_vm0 = vcmp.eq.s32.totalorder %v1644_v18, %v1679_v3 }
 0x3d6   :  { %v739_v4 = vsel %vm736_vm0, -1e+30, %v679_v27 }
 0x3d7   :  { %744 = vmax.xlane.f32.xlu1 %v739_v4 }
 0x45c   :  { %v741_v5 = vpop.xlane.xlu1 %740 }
 0x45d   :  { %vm746_vm1 = vcmp.eq.f32.partialorder %v737_v6, %v741_v5 }
 0x45e   :  { %v749_v7 = vsel %vm746_vm1, %v1644_v18, 128 }
 0x45f   :  { %v753_v9 = vshra.s32 %v749_v7, 16  ;;  %v752_v21 = vand.u32 65535, %v749_v7 }
 0x460   :  { %v743_v10 = vpop.xlane.xlu0 %742 }
 0x461   :  { %vm747_vm2 = vcmp.eq.f32.partialorder %v738_v2, %v743_v10  ;;  %v755_v11 = vcvt.s32.f32 %v753_v9  ;;  %v754_v28 = vcvt.s32.f32 %v752_v21 }
 0x462   :  { %v750_v12 = vsel %vm747_vm2, %v1644_v18, 128 }
 0x463   :  { %756 = vmin.xlane.f32.xlu0 %v755_v11  ;;  %v767_v13 = vshra.s32 %v750_v12, 16  ;;  %v766_v24 = vand.u32 65535, %v750_v12 }
 0x464   :  { %v745_v14 = vpop.xlane.xlu1 %744 }
 0x465   :  { %vm748_vm3 = vcmp.eq.f32.partialorder %v739_v4, %v745_v14  ;;  %v769_v15 = vcvt.s32.f32 %v767_v13  ;;  %v768_v32 = vcvt.s32.f32 %v766_v24 }
 0x466   :  { %v751_v8 = vsel %vm748_vm3, %v1644_v18, 128 }
 0x467   :  { %770 = vmin.xlane.f32.xlu1 %v769_v15  ;;  %v781_v16 = vshra.s32 %v751_v8, 16  ;;  %v780_v30 = vand.u32 65535, %v751_v8 }
 0x469   :  { %v783_v17 = vcvt.s32.f32 %v781_v16  ;;  %v782_v35 = vcvt.s32.f32 %v780_v30 }
 0x46b   :  { %784 = vmin.xlane.f32.xlu0 %v783_v17 }
 0x4f0   :  { %v757_v27 = vpop.xlane.xlu0 %756 }
 0x4f1   :  { %vm758_vm4 = vcmp.eq.f32.partialorder %v755_v11, %v757_v27  ;;  %v763_v37 = vcvt.f32.s32 %v757_v27 }
 0x4f2   :  { %v759_v29 = vsel %vm758_vm4, %v754_v28, inf }
 0x4f3   :  { %760 = vmin.xlane.f32.xlu1 %v759_v29  ;;  %v764_v39 = vshll.u32 %v763_v37, 16 }
 0x4f4   :  { %v771_v31 = vpop.xlane.xlu1 %770 }
 0x4f5   :  { %vm772_vm5 = vcmp.eq.f32.partialorder %v769_v15, %v771_v31  ;;  %v777_v40 = vcvt.f32.s32 %v771_v31 }
 0x4f6   :  { %v773_v33 = vsel %vm772_vm5, %v768_v32, inf }
 0x4f7   :  { %774 = vmin.xlane.f32.xlu0 %v773_v33  ;;  %v778_v44 = vshll.u32 %v777_v40, 16 }
 0x4f8   :  { %v785_v34 = vpop.xlane.xlu0 %784 }
 0x4f9   :  { %vm786_vm6 = vcmp.eq.f32.partialorder %v783_v17, %v785_v34  ;;  %v791_v45 = vcvt.f32.s32 %v785_v34 }
 0x4fa   :  { %v787_v36 = vsel %vm786_vm6, %v782_v35, inf }
 0x4fb   :  { %788 = vmin.xlane.f32.xlu1 %v787_v36  ;;  %v792_v50 = vshll.u32 %v791_v45, 16 }
 0x580   :  { %v761_v38 = vpop.xlane.xlu1 %760 }
 0x581   :  { %v762_v41 = vcvt.f32.s32 %v761_v38 }
 0x583   :  { %v1689_v42 = vadd.s32 %v764_v39, %v762_v41 }
 0x584   :  { %v775_v43 = vpop.xlane.xlu0 %774 }
 0x585   :  { %v776_v46 = vcvt.f32.s32 %v775_v43  ;;  %vm794_vm7 = vcmp.eq.s32.totalorder %v1644_v18, %v1689_v42 }
 0x586   :  { %v800_v47 = vsel %vm794_vm7, -1e+30, %v737_v6  ;;  %vm797_vm3 = vmor %vm734_vm14, %vm794_vm7 }
 0x587   :  { %v1696_v48 = vadd.s32 %v778_v44, %v776_v46  ;;  %803 = vmax.xlane.f32.xlu0 %v800_v47 }
 0x588   :  { %v789_v49 = vpop.xlane.xlu1 %788 }
 0x589   :  { %v790_v51 = vcvt.f32.s32 %v789_v49  ;;  %vm795_vm8 = vcmp.eq.s32.totalorder %v1644_v18, %v1696_v48 }
 0x58a   :  { %v1703_v52 = vsel %vm795_vm8, -1e+30, %v738_v2  ;;  %vm798_vm6 = vmor %vm735_vm15, %vm795_vm8 }
 0x58b   :  { %v1705_v53 = vadd.s32 %v792_v50, %v790_v51  ;;  %805 = vmax.xlane.f32.xlu1 %v1703_v52 }
 0x58d   :  { %vm796_vm9 = vcmp.eq.s32.totalorder %v1644_v18, %v1705_v53 }
 0x58e   :  { %v1713_v54 = vsel %vm796_vm9, -1e+30, %v739_v4 }
 0x58f   :  { %807 = vmax.xlane.f32.xlu0 %v1713_v54 }
 0x614   :  { %v804_v55 = vpop.xlane.xlu0 %803 }
 0x615   :  { %vm809_vm10 = vcmp.eq.f32.partialorder %v800_v47, %v804_v55 }
 0x616   :  { %v812_v57 = vsel %vm809_vm10, %v1644_v18, 128  ;;  %vm799_vm10 = vmor %vm736_vm0, %vm796_vm9 }
 0x617   :  { %v816_v59 = vshra.s32 %v812_v57, 16  ;;  %v815_v5 = vand.u32 65535, %v812_v57 }
 0x618   :  { %v806_v60 = vpop.xlane.xlu1 %805 }
 0x619   :  { %vm810_vm11 = vcmp.eq.f32.partialorder %v1703_v52, %v806_v60  ;;  %v818_v61 = vcvt.s32.f32 %v816_v59  ;;  %v817_v10 = vcvt.s32.f32 %v815_v5 }
 0x61a   :  { %v813_v63 = vsel %vm810_vm11, %v1644_v18, 128 }
 0x61b   :  { %819 = vmin.xlane.f32.xlu1 %v818_v61  ;;  %v830_v6 = vshra.s32 %v813_v63, 16  ;;  %v829_v7 = vand.u32 65535, %v813_v63 }
 0x61c   :  { %v808_v62 = vpop.xlane.xlu0 %807 }
 0x61d   :  { %vm811_vm12 = vcmp.eq.f32.partialorder %v1713_v54, %v808_v62  ;;  %v832_v0 = vcvt.s32.f32 %v830_v6  ;;  %v831_v14 = vcvt.s32.f32 %v829_v7 }
 0x61e   :  { %v814_v1 = vsel %vm811_vm12, %v1644_v18, 128 }
 0x61f   :  { %833 = vmin.xlane.f32.xlu0 %v832_v0  ;;  %v844_v2 = vshra.s32 %v814_v1, 16  ;;  %v843_v12 = vand.u32 65535, %v814_v1 }
 0x621   :  { %v846_v4 = vcvt.s32.f32 %v844_v2  ;;  %v845_v16 = vcvt.s32.f32 %v843_v12 }
 0x623   :  { %847 = vmin.xlane.f32.xlu1 %v846_v4 }
 0x6a8   :  { %v820_v9 = vpop.xlane.xlu1 %819 }
 0x6a9   :  { %vm821_vm13 = vcmp.eq.f32.partialorder %v818_v61, %v820_v9  ;;  %v826_v21 = vcvt.f32.s32 %v820_v9 }
 0x6aa   :  { %v822_v11 = vsel %vm821_vm13, %v817_v10, inf }
 0x6ab   :  { %823 = vmin.xlane.f32.xlu0 %v822_v11  ;;  %v827_v27 = vshll.u32 %v826_v21, 16 }
 0x6ac   :  { %v834_v13 = vpop.xlane.xlu0 %833 }
 0x6ad   :  { %vm835_vm1 = vcmp.eq.f32.partialorder %v832_v0, %v834_v13  ;;  %v840_v28 = vcvt.f32.s32 %v834_v13 }
 0x6ae   :  { %v836_v15 = vsel %vm835_vm1, %v831_v14, inf }
 0x6af   :  { %837 = vmin.xlane.f32.xlu1 %v836_v15  ;;  %v841_v32 = vshll.u32 %v840_v28, 16 }
 0x6b0   :  { %v848_v8 = vpop.xlane.xlu1 %847 }
 0x6b1   :  { %vm849_vm2 = vcmp.eq.f32.partialorder %v846_v4, %v848_v8  ;;  %v854_v33 = vcvt.f32.s32 %v848_v8 }
 0x6b2   :  { %v850_v17 = vsel %vm849_vm2, %v845_v16, inf }
 0x6b3   :  { %851 = vmin.xlane.f32.xlu0 %v850_v17  ;;  %v855_v39 = vshll.u32 %v854_v33, 16 }
 0x738   :  { %v824_v24 = vpop.xlane.xlu0 %823 }
 0x739   :  { %v825_v29 = vcvt.f32.s32 %v824_v24 }
 0x73b   :  { %v828_v30 = vadd.s32 %v827_v27, %v825_v29 }
 0x73c   :  { %v838_v31 = vpop.xlane.xlu1 %837 }
 0x73d   :  { %v839_v34 = vcvt.f32.s32 %v838_v31  ;;  %vm857_vm4 = vcmp.eq.s32.totalorder %v1644_v18, %v828_v30 }
 0x73e   :  { %v863_v35 = vsel %vm857_vm4, -1e+30, %v800_v47  ;;  %vm1728_vm5 = vmor %vm797_vm3, %vm857_vm4 }
 0x73f   :  { %v842_v37 = vadd.s32 %v841_v32, %v839_v34  ;;  %866 = vmax.xlane.f32.xlu1 %v863_v35 }
 0x740   :  { %v852_v38 = vpop.xlane.xlu0 %851 }
 0x741   :  { %v853_v40 = vcvt.f32.s32 %v852_v38  ;;  %vm858_vm14 = vcmp.eq.s32.totalorder %v1644_v18, %v842_v37 }
 0x742   :  { %v864_v58 = vsel %vm858_vm14, -1e+30, %v1703_v52  ;;  %vm1740_vm7 = vmor %vm798_vm6, %vm858_vm14 }
 0x743   :  { %v856_v42 = vadd.s32 %v855_v39, %v853_v40  ;;  %868 = vmax.xlane.f32.xlu0 %v864_v58 }
 0x745   :  { %vm859_vm11 = vcmp.eq.s32.totalorder %v1644_v18, %v856_v42 }
 0x746   :  { %v865_v56 = vsel %vm859_vm11, -1e+30, %v1713_v54  ;;  %vm1752_vm15 = vmor %vm799_vm10, %vm859_vm11 }
 0x747   :  { %870 = vmax.xlane.f32.xlu1 %v865_v56 }
 0x7cc   :  { %v867_v44 = vpop.xlane.xlu1 %866 }
 0x7cd   :  { %vm872_vm8 = vcmp.eq.f32.partialorder %v863_v35, %v867_v44 }
 0x7ce   :  { %v875_v45 = vsel %vm872_vm8, %v1644_v18, 128 }
 0x7cf   :  { %v879_v46 = vshra.s32 %v875_v45, 16  ;;  %v878_v55 = vand.u32 65535, %v875_v45 }
 0x7d0   :  { %v869_v47 = vpop.xlane.xlu0 %868 }
 0x7d1   :  { %vm873_vm12 = vcmp.eq.f32.partialorder %v864_v58, %v869_v47  ;;  %v881_v48 = vcvt.s32.f32 %v879_v46  ;;  %v880_v60 = vcvt.s32.f32 %v878_v55 }
 0x7d2   :  { %v876_v3 = vsel %vm873_vm12, %v1644_v18, 128 }
 0x7d3   :  { %882 = vmin.xlane.f32.xlu0 %v881_v48  ;;  %v893_v49 = vshra.s32 %v876_v3, 16  ;;  %v892_v57 = vand.u32 65535, %v876_v3 }
 0x7d4   :  { %v871_v50 = vpop.xlane.xlu1 %870 }
 0x7d5   :  { %vm874_vm0 = vcmp.eq.f32.partialorder %v865_v56, %v871_v50  ;;  %v895_v51 = vcvt.s32.f32 %v893_v49  ;;  %v894_v62 = vcvt.s32.f32 %v892_v57 }
 0x7d6   :  { %v877_v52 = vsel %vm874_vm0, %v1644_v18, 128 }
 0x7d7   :  { %896 = vmin.xlane.f32.xlu1 %v895_v51  ;;  %v907_v53 = vshra.s32 %v877_v52, 16  ;;  %v906_v63 = vand.u32 65535, %v877_v52 }
 0x7d9   :  { %v909_v54 = vcvt.s32.f32 %v907_v53  ;;  %v908_v2 = vcvt.s32.f32 %v906_v63 }
 0x7db   :  { %910 = vmin.xlane.f32.xlu0 %v909_v54 }
 0x860   :  { %v883_v59 = vpop.xlane.xlu0 %882 }
 0x861   :  { %vm884_vm9 = vcmp.eq.f32.partialorder %v881_v48, %v883_v59  ;;  %v889_v5 = vcvt.f32.s32 %v883_v59 }
 0x862   :  { %v885_v61 = vsel %vm884_vm9, %v880_v60, inf }
 0x863   :  { %886 = vmin.xlane.f32.xlu1 %v885_v61  ;;  %v890_v9 = vshll.u32 %v889_v5, 16 }
 0x864   :  { %v897_v6 = vpop.xlane.xlu1 %896 }
 0x865   :  { %vm898_vm13 = vcmp.eq.f32.partialorder %v895_v51, %v897_v6  ;;  %v903_v10 = vcvt.f32.s32 %v897_v6 }
 0x866   :  { %v899_v0 = vsel %vm898_vm13, %v894_v62, inf }
 0x867   :  { %900 = vmin.xlane.f32.xlu0 %v899_v0  ;;  %v904_v14 = vshll.u32 %v903_v10, 16 }
 0x868   :  { %v911_v1 = vpop.xlane.xlu0 %910 }
 0x869   :  { %vm912_vm1 = vcmp.eq.f32.partialorder %v909_v54, %v911_v1  ;;  %v917_v15 = vcvt.f32.s32 %v911_v1 }
 0x86a   :  { %v913_v4 = vsel %vm912_vm1, %v908_v2, inf }
 0x86b   :  { %914 = vmin.xlane.f32.xlu1 %v913_v4  ;;  %v918_v24 = vshll.u32 %v917_v15, 16 }
 0x8f0   :  { %v887_v7 = vpop.xlane.xlu1 %886 }
 0x8f1   :  { %v888_v11 = vcvt.f32.s32 %v887_v7 }
 0x8f3   :  { %v891_v12 = vadd.s32 %v890_v9, %v888_v11 }
 0x8f4   :  { %v901_v13 = vpop.xlane.xlu0 %900 }
 0x8f5   :  { %vm920_vm2 = vcmp.eq.s32.totalorder %v1644_v18, %v891_v12  ;;  %v902_v8 = vcvt.f32.s32 %v901_v13 }
 0x8f6   :  { %vm923_vm3 = vmor %vm1728_vm5, %vm920_vm2 }
 0x8f7   :  { %v926_v16 = vsel %vm923_vm3, %v671_v20, 0.0  ;;  %v905_v17 = vadd.s32 %v904_v14, %v902_v8 }
 0x8f8   :  { %929 = vst [vmem:[#allocation2] sm:$0xff] %v926_v16  ;;  %v915_v21 = vpop.xlane.xlu1 %914 }
 0x8f9   :  { %vm921_vm4 = vcmp.eq.s32.totalorder %v1644_v18, %v905_v17  ;;  %v916_v27 = vcvt.f32.s32 %v915_v21 }
 0x8fa   :  { %vm924_vm6 = vmor %vm1740_vm7, %vm921_vm4 }
 0x8fb   :  { %v927_v28 = vsel %vm924_vm6, %v672_v23, 0.0  ;;  %v919_v29 = vadd.s32 %v918_v24, %v916_v27 }
 0x8fc   :  { %930 = vst [vmem:[#allocation2 + $0x8] sm:$0xff] %v927_v28 }
 0x8fd   :  { %vm922_vm5 = vcmp.eq.s32.totalorder %v1644_v18, %v919_v29 }
 0x8fe   :  { %vm925_vm14 = vmor %vm1752_vm15, %vm922_vm5 }
 0x8ff   :  { %v928_v19 = vsel %vm925_vm14, %v673_v26, 0.0 }
 0x900   :  { %931 = vst [vmem:[#allocation2 + $0x10] sm:$0xff] %v928_v19 }
 0x901   :  { %1351 = shalt.err (!%p1348_p4)
}
 0x902   :  { %s1352_s24 = scalar_lea.hbm %s1791_s5, 384 }
 0x903   :  { %p1353_p5 = scmp.ne.s32.totalorder %s1791_s5, %s1352_s24  ;;  %p1356_p6 = scmp.lt.u32.totalorder %s1352_s24, %s1791_s5 }
 0x905   :  { %p1358_p7 = pnand %p1356_p6, %p1353_p5 }
 0x907   :  { %1361 = shalt.err (!%p1358_p7)
}
 0x908   :  { %s1368_s29 = smov 128   ;;  %s1369_s30 = smov 8  }
 0x909   :  { %943 = dma.vmem_to_hbm [thread:$0]  %s938_s21, 384, %s1791_s5, [#allocation3], %s1368_s29, %s1368_s29, %s1369_s30  }
 0x90a   :  { %1362 = dma.done.wait [#allocation3], 384  }
 0x90b   :  { %1363 = vsyncadd [#allocation3], 4294966912 }
 0x90c   :  { %947 = vsyncpa [#allocation3], 1 }

</bundles_post_ra>
